<compile_context>
chip_gen: v7x
topology: tpu7x:2x2x1
jax: 0.10.0
libtpu: 0.0.40
codegen_flags: <defaults>
</compile_context>

<pallas_src>
import jax
import jax.numpy as jnp
from jax.experimental import pallas as pl
from jax.experimental.pallas import tpu as pltpu

GS_NUM = 32          # "hidden" feature count (Gs_num)
N_ELEM = 5           # H, C, N, O, F
LANE_PAD = 128       # lane padding for the feature axis (GS_NUM + bias lane <= 128)

# atomic number -> element row (H:1->0, C:6->1, N:7->2, O:8->3, F:9->4).
# PyTorch's dict lookup raises KeyError on unknown atomic numbers; here unknown
# numbers clamp to a valid row (documented behavior, not an error).
# TODO(synk): no in-kernel equivalent of Python's KeyError on unknown atomic number.
_ELEM_LUT = jnp.array([0, 0, 0, 0, 0, 0, 1, 2, 3, 4], dtype=jnp.int32)


def _atomic_kernel(idx_ref, x_ref, w_ref, o_ref):
    # idx_ref: SMEM (1,)       int32 -- selected element row (scalar prefetch,
    #                                   only consumed by the weight index_map)
    # x_ref:   VMEM (1, 128)   f32   -- padded features, x_ref[0, GS_NUM] == 1.0
    # w_ref:   VMEM (1, 1, 128) f32  -- ONLY the selected weight row (+ bias lane)
    # o_ref:   VMEM (1, 128)   f32   -- lane-dense output (scalar broadcast)
    del idx_ref
    acc = jnp.sum(x_ref[...] * w_ref[0], axis=-1, keepdims=True)   # (1, 1)
    o_ref[...] = jnp.broadcast_to(acc, o_ref.shape)


def prepare_params(weights, biases):
    """One-time packing of the stacked per-element Linear(Gs_num, 1) params.

    weights: (5, GS_NUM) f32, biases: (5,) f32.
    Returns w_pack (N_ELEM, 1, 128) f32 with the bias folded into lane GS_NUM.
    Keep this around; it is off the per-call path.
    """
    w_pack = jnp.zeros((N_ELEM, 1, LANE_PAD), jnp.float32)
    w_pack = w_pack.at[:, 0, :GS_NUM].set(weights.astype(jnp.float32))
    w_pack = w_pack.at[:, 0, GS_NUM].set(biases.astype(jnp.float32))
    return w_pack


def atomic_net_forward(x, w_pack):
    """x: (GS_NUM+1,) f32 with x[0] the atomic number in {1,6,7,8,9}.
    Returns (1,) f32 = W_k @ x[1:] + b_k for the selected element net."""
    # int(x[0]) truncates toward zero in PyTorch -> astype(int32) matches that.
    k = x[0].astype(jnp.int32)
    idx = _ELEM_LUT[jnp.clip(k, 0, 9)]
    idx_arr = idx.reshape((1,))

    x_pad = jnp.zeros((1, LANE_PAD), jnp.float32)
    x_pad = x_pad.at[0, :GS_NUM].set(x[1:].astype(jnp.float32))
    x_pad = x_pad.at[0, GS_NUM].set(1.0)   # bias lane

    out = pl.pallas_call(
        _atomic_kernel,
        out_shape=jax.ShapeDtypeStruct((1, LANE_PAD), jnp.float32),
        grid_spec=pltpu.PrefetchScalarGridSpec(
            num_scalar_prefetch=1,
            grid=(1,),
            in_specs=[
                # feature vector: single (1, 128) block
                pl.BlockSpec((1, LANE_PAD), lambda i, idx_ref: (0, 0)),
                # weights: gather ONLY the selected row via the prefetched index;
                # last two block dims equal the full array dims -> layout-safe.
                pl.BlockSpec((1, 1, LANE_PAD), lambda i, idx_ref: (idx_ref[0], 0, 0)),
            ],
            out_specs=pl.BlockSpec((1, LANE_PAD), lambda i, idx_ref: (0, 0)),
        ),
        compiler_params=pltpu.CompilerParams(
            dimension_semantics=("arbitrary",)),
    )(idx_arr, x_pad, w_pack)
    return out[0, :1]


if __name__ == "__main__":
    key = jax.random.PRNGKey(0)
    kw, kb, kx = jax.random.split(key, 3)

    # Deterministic "Linear(Gs_num, 1)" params for the 5 element nets
    # (PyTorch-style uniform(-1/sqrt(Gs_num), 1/sqrt(Gs_num)) init).
    bound = 1.0 / jnp.sqrt(jnp.float32(GS_NUM))
    weights = jax.random.uniform(kw, (N_ELEM, GS_NUM), jnp.float32, -bound, bound)
    biases = jax.random.uniform(kb, (N_ELEM,), jnp.float32, -bound, bound)

    # One-time parameter packing (hoisted out of the per-call path).
    w_pack = prepare_params(weights, biases)

    # Input: x[0] = atomic number (oxygen = 8), x[1:] = Gs_num features.
    feats = jax.random.normal(kx, (GS_NUM,), jnp.float32)
    x = jnp.concatenate([jnp.array([8.0], jnp.float32), feats])

    fwd = jax.jit(atomic_net_forward)
    out = jax.block_until_ready(fwd(x, w_pack))

    # Pure-JAX reference check of the selected linear head.
    ref_idx = 3  # atomic number 8 -> O -> row 3
    ref = jnp.dot(weights[ref_idx], feats) + biases[ref_idx]
    assert out.shape == (1,)
    assert jnp.allclose(out[0], ref, atol=1e-5, rtol=1e-5)

    print("KERNEL_OK")
</pallas_src>

<mosaic_0001>
module attributes {stable_mosaic.version = 11 : i64} {
  func.func @_atomic_kernel(%arg0: i32, %arg1: memref<1xi32, #tpu.memory_space<smem>>, %arg2: memref<1x128xf32, #tpu.memory_space<vmem>>, %arg3: memref<1x1x128xf32, #tpu.memory_space<vmem>>, %arg4: memref<1x128xf32, #tpu.memory_space<vmem>>) attributes {dimension_semantics = [#tpu.dimension_semantics<arbitrary>], iteration_bounds = array<i64: 1>, scalar_prefetch = 1 : i64, scratch_operands = 0 : i64, tpu.core_type = #tpu.core_type<tc>, window_params = [{pipeline_mode = #tpu.pipeline_mode<synchronous>, transform_indices = @transform_0, window_bounds = array<i64: 1, 128>}, {transform_indices = @transform_1, window_bounds = array<i64: 1, 1, 128>}, {pipeline_mode = #tpu.pipeline_mode<synchronous>, transform_indices = @transform_2, window_bounds = array<i64: 1, 128>}]} {
    %c0 = arith.constant 0 : index
    %c0_0 = arith.constant 0 : index
    %0 = vector.load %arg2[%c0, %c0_0] : memref<1x128xf32, #tpu.memory_space<vmem>>, vector<1x128xf32>
    %c0_1 = arith.constant 0 : index
    %c0_2 = arith.constant 0 : index
    %c0_3 = arith.constant 0 : index
    %1 = vector.load %arg3[%c0_1, %c0_2, %c0_3] : memref<1x1x128xf32, #tpu.memory_space<vmem>>, vector<1x1x128xf32>
    %2 = vector.shape_cast %1 : vector<1x1x128xf32> to vector<1x128xf32>
    %3 = arith.mulf %0, %2 : vector<1x128xf32>
    %cst = arith.constant dense<0.000000e+00> : vector<1xf32>
    %4 = vector.multi_reduction <add>, %3, %cst [1] : vector<1x128xf32> to vector<1xf32>
    %5 = vector.shape_cast %4 : vector<1xf32> to vector<1x1xf32>
    %6 = vector.shape_cast %5 : vector<1x1xf32> to vector<1x1xf32>
    %7 = vector.broadcast %6 : vector<1x1xf32> to vector<1x128xf32>
    %c0_4 = arith.constant 0 : index
    %c0_5 = arith.constant 0 : index
    %8 = vector.load %arg4[%c0_4, %c0_5] : memref<1x128xf32, #tpu.memory_space<vmem>>, vector<1x128xf32>
    tpu.vector_store %arg4[%c0_4, %c0_5], %7 {strides = array<i32>} : memref<1x128xf32, #tpu.memory_space<vmem>>, vector<1x128xf32>,
    return
  }
  func.func @transform_0(%arg0: i32, %arg1: memref<1xi32, #tpu.memory_space<smem>>) -> (i32, i32) {
    %c0_i32 = arith.constant 0 : i32
    %c0_i32_0 = arith.constant 0 : i32
    %c0_i32_1 = arith.constant 0 : i32
    return %c0_i32, %c0_i32_0 : i32, i32
  }
  func.func @transform_1(%arg0: i32, %arg1: memref<1xi32, #tpu.memory_space<smem>>) -> (i32, i32, i32) {
    %c0 = arith.constant 0 : index
    %0 = memref.load %arg1[%c0] : memref<1xi32, #tpu.memory_space<smem>>
    %c0_i32 = arith.constant 0 : i32
    %c0_i32_0 = arith.constant 0 : i32
    %c0_i32_1 = arith.constant 0 : i32
    return %0, %c0_i32, %c0_i32_0 : i32, i32, i32
  }
  func.func @transform_2(%arg0: i32, %arg1: memref<1xi32, #tpu.memory_space<smem>>) -> (i32, i32) {
    %c0_i32 = arith.constant 0 : i32
    %c0_i32_0 = arith.constant 0 : i32
    %c0_i32_1 = arith.constant 0 : i32
    return %c0_i32, %c0_i32_0 : i32, i32
  }
}

</mosaic_0001>

<bundles_post_ra>
// kernel: atomic_net_forward.1
= control target key start
LH: loop header
LB: loop body
LE: loop exit
PB: predicated region body
PF: predicated region fallthrough
CT: control target
= control target key end

     0   :  { %s123_s0 = inlined_call_operand.<no memory space> [shape: s32[1], index: 0, kind: input, shape index: {}]   ;;  %s124_s1 = inlined_call_operand.vmem [shape: f32[1,128], index: 1, kind: input, shape index: {}]   ;;  %s125_s2 = inlined_call_operand.vmem [shape: f32[5,1,128], index: 2, kind: input, shape index: {}]   ;;  %s126_s3 = inlined_call_operand.hbm [shape: f32[1,128], index: 3, kind: output, shape index: {}]  }
   0x1   :  { %p24_p0 = scmp.lt.s32.totalorder %s123_s0, 4 }
   0x2   :  { %9 = vsyncpa [#allocation5], 0  ;;  %v28_v0 = vld [vmem:[%s124_s1] sm:$0x1]  ;;  %vm31_vm0 = vcmask 1040384   ;;  %s78_s21 = smov [#allocation4]  }
   0x3   :  { %s128_s0 = smov (!%p24_p0, %s123_s0), 4  ;;  %s42_s22 = sshll.u32 %s78_s21, 4  ;;  %s43_s22 = int_to_ptr.vmem [resolvable:$true] %s42_s22 }
   0x4   :  { %s26_s20 = scalar_lea.vmem %s125_s2, %s128_s0  ;;  %s54_s23 = scalar_lea.vmem %s43_s22, 16 }
   0x5   :  { %v29_v1 = vld [vmem:[%s26_s20] sm:$0x1]  ;;  %p55_p1 = scmp.ne.s32.totalorder %s43_s22, %s54_s23  ;;  %s58_s24 = scalar_lea.vmem %s43_s22, 32 }
   0x6   :  { %v30_v2 = vmul.f32 %v29_v1, %v28_v0  ;;  %p59_p2 = scmp.lt.s32.totalorder %s43_s22, %s43_s22  ;;  %p60_p3 = scmp.lt.s32.totalorder %s58_s24, %s54_s23 }
   0x8   :  { %v32_v3 = vsel %vm31_vm0, %v30_v2, 0.0  ;;  %p61_p4 = por %p60_p3, %p59_p2 }
   0x9   :  { %33 = vadd.xlane.f32.xlu0 %v32_v3 }
   0xa   :  { %p62_p5 = pnand %p61_p4, %p55_p1 }
  0x96   :  { %v34_v4 = vpop.xlane.xlu0 %33 }
  0x97   :  { %35 = vst [vmem:[#allocation4] sm:$0x1] %v34_v4 }
  0x98   :  { %65 = shalt.err (!%p62_p5)
}
  0x99   :  { %s66_s2 = scalar_lea.hbm %s126_s3, 16 }
  0x9a   :  { %p67_p6 = scmp.ne.s32.totalorder %s126_s3, %s66_s2  ;;  %p70_p7 = scmp.lt.u32.totalorder %s66_s2, %s126_s3 }
  0x9c   :  { %p72_p8 = pnand %p70_p7, %p67_p6 }
  0x9e   :  { %75 = shalt.err (!%p72_p8)
}
  0x9f   :  { %45 = dma.vmem_to_hbm [thread:$0]  %s43_s22, 16, %s126_s3, [#allocation5]  }
  0xa0   :  { %76 = dma.done.wait [#allocation5], 16  }
  0xa1   :  { %77 = vsyncadd [#allocation5], 4294967280 }
  0xa2   :  { %49 = vsyncpa [#allocation5], 1 }

</bundles_post_ra>
